<compile_context>
chip_gen: v7x
topology: tpu7x:2x2x1
jax: 0.10.0
libtpu: 0.0.40
codegen_flags: <defaults>
</compile_context>

<pallas_src>
import functools

import jax
import jax.numpy as jnp
import numpy as np
from jax.experimental import pallas as pl
from jax.experimental.pallas import tpu as pltpu


# ----------------------------- Pallas kernel ------------------------------ #
def _fused_matmul_kernel(a_ref, w_ref, bias_ref, *rest, relu, has_residual):
    """acc = A @ W (f32 accumulation over the K grid axis);
    epilogue at the last K step: + bias (+ residual) (+ ReLU), cast, store."""
    if has_residual:
        res_ref, o_ref, acc_ref = rest
    else:
        o_ref, acc_ref = rest

    @pl.when(pl.program_id(2) == 0)
    def _():
        acc_ref[...] = jnp.zeros_like(acc_ref)

    acc_ref[...] += jnp.dot(a_ref[...], w_ref[...],
                            preferred_element_type=jnp.float32)

    @pl.when(pl.program_id(2) == pl.num_programs(2) - 1)
    def _():
        out = acc_ref[...] + bias_ref[...]
        if has_residual:
            out = out + res_ref[...].astype(jnp.float32)
        if relu:
            out = jnp.maximum(out, 0.0)
        o_ref[...] = out.astype(o_ref.dtype)


def _round_up(x, m):
    return ((x + m - 1) // m) * m


def _pick_tile(dim, max_tile, align):
    """Largest tile <= max_tile that is a multiple of `align` and divides the
    align-padded dim (minimal padding, (8,128)-legal blocks)."""
    padded = _round_up(dim, align)
    tile = align
    for cand in range(max_tile, align - 1, -align):
        if padded % cand == 0:
            tile = cand
            break
    return tile, padded


def _pad2d(x, rows, cols):
    pr, pc = rows - x.shape[0], cols - x.shape[1]
    if pr or pc:
        x = jnp.pad(x, ((0, pr), (0, pc)))
    return x


def fused_matmul(a, w, bias, res=None, *, relu, out_dtype=jnp.float32,
                 tm=512, tn=256, tk=512):
    """out = A @ W + bias (+ res) (+ ReLU).

    a: (M, K)  -> cast to bf16 (MXU operand)
    w: (K, N)  -> cast to bf16; per-channel BN scale must be pre-folded
    bias: (N,) f32, added in the epilogue
    res: optional (M, N) residual added before the activation
    """
    M, K = a.shape
    K2, N = w.shape
    assert K == K2 and bias.shape == (N,)

    tm, Mp = _pick_tile(M, tm, 8)
    tn, Np = _pick_tile(N, tn, 128)
    tk, Kp = _pick_tile(K, tk, 128)

    a_p = _pad2d(a.astype(jnp.bfloat16), Mp, Kp)
    w_p = _pad2d(w.astype(jnp.bfloat16), Kp, Np)
    b_p = _pad2d(bias.astype(jnp.float32).reshape(1, N), 1, Np)

    operands = [a_p, w_p, b_p]
    in_specs = [
        pl.BlockSpec((tm, tk), lambda i, j, k: (i, k)),
        pl.BlockSpec((tk, tn), lambda i, j, k: (k, j)),
        pl.BlockSpec((1, tn), lambda i, j, k: (0, j)),
    ]
    has_residual = res is not None
    if has_residual:
        operands.append(_pad2d(res.astype(jnp.float32), Mp, Np))
        in_specs.append(pl.BlockSpec((tm, tn), lambda i, j, k: (i, j)))

    out_bytes = Mp * Np * np.dtype(out_dtype).itemsize
    in_bytes = sum(int(np.prod(o.shape)) * o.dtype.itemsize for o in operands)
    cost = pl.CostEstimate(flops=2 * Mp * Np * Kp, transcendentals=0,
                           bytes_accessed=in_bytes + out_bytes)

    out = pl.pallas_call(
        functools.partial(_fused_matmul_kernel, relu=relu,
                          has_residual=has_residual),
        out_shape=jax.ShapeDtypeStruct((Mp, Np), out_dtype),
        grid_spec=pltpu.PrefetchScalarGridSpec(
            num_scalar_prefetch=0,
            grid=(Mp // tm, Np // tn, Kp // tk),
            in_specs=in_specs,
            out_specs=pl.BlockSpec((tm, tn), lambda i, j, k: (i, j)),
            scratch_shapes=[pltpu.VMEM((tm, tn), jnp.float32)]),
        compiler_params=pltpu.CompilerParams(
            dimension_semantics=("parallel", "parallel", "arbitrary"),
            vmem_limit_bytes=32 * 1024 * 1024),
        cost_estimate=cost,
    )(*operands)
    return out[:M, :N]


# ------------------------------- glue (JAX) -------------------------------- #
def im2col(x_nhwc, kh, kw, stride, padding):
    """(N, H, W, C) -> (N*Ho*Wo, kh*kw*C), column order (ky, kx, c)."""
    N, H, W, C = x_nhwc.shape
    xp = jnp.pad(x_nhwc, ((0, 0), (padding, padding), (padding, padding), (0, 0)))
    Ho = (H + 2 * padding - kh) // stride + 1
    Wo = (W + 2 * padding - kw) // stride + 1
    cols = []
    for ky in range(kh):
        for kx in range(kw):
            cols.append(xp[:, ky:ky + (Ho - 1) * stride + 1:stride,
                            kx:kx + (Wo - 1) * stride + 1:stride, :])
    patches = jnp.concatenate(cols, axis=-1)  # (N, Ho, Wo, kh*kw*C)
    return patches.reshape(N * Ho * Wo, kh * kw * C), Ho, Wo


def _w_to_mat(w_oihw):
    """PyTorch (Cout, Cin, kh, kw) -> (kh*kw*Cin, Cout), matching im2col order."""
    cout, cin, kh, kw = w_oihw.shape
    return jnp.transpose(w_oihw, (2, 3, 1, 0)).reshape(kh * kw * cin, cout)


def init_params(key, cin, cout, stride, expansion=1):
    keys = jax.random.split(key, 8)
    p = {
        "w1": 0.1 * jax.random.normal(keys[0], (cout, cin, 3, 3), jnp.float32),
        "bn1_gamma": 1.0 + 0.1 * jax.random.normal(keys[1], (cout,), jnp.float32),
        "bn1_beta": 0.1 * jax.random.normal(keys[2], (cout,), jnp.float32),
        "bn1_mean": 0.1 * jax.random.normal(keys[3], (cout,), jnp.float32),
        "bn1_var": jnp.abs(jax.random.normal(keys[4], (cout,), jnp.float32)) + 0.5,
        "w2": 0.1 * jax.random.normal(keys[5], (cout, cout, 3, 3), jnp.float32),
    }
    has_shortcut = (stride != 1) or (cin != expansion * cout)
    if has_shortcut:
        cexp = expansion * cout
        ks = jax.random.split(keys[7], 4)
        p["ws"] = 0.1 * jax.random.normal(keys[6], (cexp, cin, 1, 1), jnp.float32)
        p["bns_gamma"] = 1.0 + 0.1 * jax.random.normal(ks[0], (cexp,), jnp.float32)
        p["bns_beta"] = 0.1 * jax.random.normal(ks[1], (cexp,), jnp.float32)
        p["bns_mean"] = 0.1 * jax.random.normal(ks[2], (cexp,), jnp.float32)
        p["bns_var"] = jnp.abs(jax.random.normal(ks[3], (cexp,), jnp.float32)) + 0.5
    return p, has_shortcut


def basic_block_forward(x_nchw, params, stride, has_shortcut, eps=1e-5):
    x = jnp.transpose(x_nchw, (0, 2, 3, 1)).astype(jnp.float32)   # NHWC
    N, H, W, Cin = x.shape
    Cout = params["w1"].shape[0]
    x16 = x.astype(jnp.bfloat16)

    # --- conv1 (3x3, stride) + BN1 (scale folded into W) + ReLU ----------- #
    a1, Ho, Wo = im2col(x16, 3, 3, stride, 1)
    M = N * Ho * Wo
    s1 = params["bn1_gamma"] / jnp.sqrt(params["bn1_var"] + eps)
    b1 = params["bn1_beta"] - params["bn1_mean"] * s1
    w1m = _w_to_mat(params["w1"]) * s1[None, :]
    y1 = fused_matmul(a1, w1m, b1, relu=True, out_dtype=jnp.bfloat16)

    a2, _, _ = im2col(y1.reshape(N, Ho, Wo, Cout), 3, 3, 1, 1)
    w2m = _w_to_mat(params["w2"])

    # --- conv2 (3x3, s=1) + shortcut + ReLU -------------------------------- #
    if has_shortcut:
        # 1x1 shortcut conv + BN folded into conv2 as extra K columns; its
        # im2col is just the strided input, so no extra kernel launch and no
        # (M, Cout) shortcut tensor round-trips through HBM.
        xs, _, _ = im2col(x16, 1, 1, stride, 0)                # (M, Cin)
        ss = params["bns_gamma"] / jnp.sqrt(params["bns_var"] + eps)
        bs = params["bns_beta"] - params["bns_mean"] * ss
        wsm = _w_to_mat(params["ws"]) * ss[None, :]
        a_cat = jnp.concatenate([a2, xs.astype(a2.dtype)], axis=1)
        w_cat = jnp.concatenate([w2m, wsm], axis=0)
        out = fused_matmul(a_cat, w_cat, bs, relu=True)
    else:
        # identity shortcut (stride==1, Cin==Cout): residual input to conv2.
        res = x.reshape(M, Cout)
        out = fused_matmul(a2, w2m, jnp.zeros((Cout,), jnp.float32),
                           res=res, relu=True)

    return jnp.transpose(out.reshape(N, Ho, Wo, Cout), (0, 3, 1, 2))  # NCHW


# -------------------------- pure-JAX reference ------------------------------ #
def reference_forward(x, params, stride, has_shortcut, eps=1e-5):
    def conv(x, w, s, p):
        return jax.lax.conv_general_dilated(
            x, w, (s, s), [(p, p), (p, p)],
            dimension_numbers=("NCHW", "OIHW", "NCHW"))

    def bn(x, g, b, m, v):
        g, b, m, v = (t[None, :, None, None] for t in (g, b, m, v))
        return (x - m) / jnp.sqrt(v + eps) * g + b

    out = conv(x, params["w1"], stride, 1)
    out = jnp.maximum(bn(out, params["bn1_gamma"], params["bn1_beta"],
                         params["bn1_mean"], params["bn1_var"]), 0.0)
    out = conv(out, params["w2"], 1, 1)
    if has_shortcut:
        sc = conv(x, params["ws"], stride, 0)
        sc = bn(sc, params["bns_gamma"], params["bns_beta"],
                params["bns_mean"], params["bns_var"])
    else:
        sc = x
    return jnp.maximum(out + sc, 0.0)


if __name__ == "__main__":
    key = jax.random.PRNGKey(0)
    kx, kp, kx2, kp2 = jax.random.split(key, 4)

    # --- Case 1: projection shortcut (batch=2, Cin=4, Cout=8, 16x16, stride=2)
    N, Cin, H, W = 2, 4, 16, 16
    Cout, stride = 8, 2
    x = jax.random.normal(kx, (N, Cin, H, W), jnp.float32)
    params, has_shortcut = init_params(kp, Cin, Cout, stride, expansion=1)

    fwd = jax.jit(functools.partial(basic_block_forward, stride=stride,
                                    has_shortcut=has_shortcut))
    out = jax.block_until_ready(fwd(x, params))
    ref = jax.block_until_ready(reference_forward(x, params, stride, has_shortcut))
    assert out.shape == ref.shape == (N, Cout, H // stride, W // stride)
    # bf16 MXU operands (f32 accumulation) -> relaxed tolerance vs f32 reference.
    np.testing.assert_allclose(np.asarray(out), np.asarray(ref),
                               atol=1e-1, rtol=5e-2)

    # --- Case 2: identity shortcut (stride=1, Cin == Cout) ------------------
    N2, C2, H2, W2, stride2 = 2, 8, 8, 8, 1
    x2 = jax.random.normal(kx2, (N2, C2, H2, W2), jnp.float32)
    params2, has_shortcut2 = init_params(kp2, C2, C2, stride2, expansion=1)

    fwd2 = jax.jit(functools.partial(basic_block_forward, stride=stride2,
                                     has_shortcut=has_shortcut2))
    out2 = jax.block_until_ready(fwd2(x2, params2))
    ref2 = jax.block_until_ready(
        reference_forward(x2, params2, stride2, has_shortcut2))
    assert out2.shape == ref2.shape == (N2, C2, H2, W2)
    np.testing.assert_allclose(np.asarray(out2), np.asarray(ref2),
                               atol=1e-1, rtol=5e-2)

    print("KERNEL_OK")
</pallas_src>

<mosaic_0001>
module attributes {stable_mosaic.version = 11 : i64} {
  func.func @_fused_matmul_kernel(%arg0: i32, %arg1: i32, %arg2: i32, %arg3: memref<128x128xbf16, #tpu.memory_space<vmem>>, %arg4: memref<128x128xbf16, #tpu.memory_space<vmem>>, %arg5: memref<1x128xf32, #tpu.memory_space<vmem>>, %arg6: memref<128x128xbf16, #tpu.memory_space<vmem>>, %arg7: memref<128x128xf32, #tpu.memory_space<vmem>>) attributes {dimension_semantics = [#tpu.dimension_semantics<parallel>, #tpu.dimension_semantics<parallel>, #tpu.dimension_semantics<arbitrary>], iteration_bounds = array<i64: 1, 1, 1>, scalar_prefetch = 0 : i64, scratch_operands = 1 : i64, tpu.core_type = #tpu.core_type<tc>, window_params = [{transform_indices = @transform_0, window_bounds = array<i64: 128, 128>}, {transform_indices = @transform_1, window_bounds = array<i64: 128, 128>}, {transform_indices = @transform_2, window_bounds = array<i64: 1, 128>}, {transform_indices = @transform_3, window_bounds = array<i64: 128, 128>}]} {
    %c0_i32 = arith.constant 0 : i32
    %0 = arith.cmpi eq, %arg2, %c0_i32 : i32
    %1 = arith.extui %0 : i1 to i32
    %c0_i32_0 = arith.constant 0 : i32
    %2 = arith.cmpi ne, %1, %c0_i32_0 : i32
    scf.if %2 {
      %cst_10 = arith.constant 0.000000e+00 : f32
      %12 = vector.broadcast %cst_10 : f32 to vector<128x128xf32>
      %c0_11 = arith.constant 0 : index
      %c0_12 = arith.constant 0 : index
      %13 = vector.load %arg7[%c0_11, %c0_12] : memref<128x128xf32, #tpu.memory_space<vmem>>, vector<128x128xf32>
      tpu.vector_store %arg7[%c0_11, %c0_12], %12 {strides = array<i32>} : memref<128x128xf32, #tpu.memory_space<vmem>>, vector<128x128xf32>,
    } else {
    }
    %c0 = arith.constant 0 : index
    %c0_1 = arith.constant 0 : index
    %3 = vector.load %arg7[%c0, %c0_1] : memref<128x128xf32, #tpu.memory_space<vmem>>, vector<128x128xf32>
    %c0_2 = arith.constant 0 : index
    %c0_3 = arith.constant 0 : index
    %4 = vector.load %arg3[%c0_2, %c0_3] : memref<128x128xbf16, #tpu.memory_space<vmem>>, vector<128x128xbf16>
    %c0_4 = arith.constant 0 : index
    %c0_5 = arith.constant 0 : index
    %5 = vector.load %arg4[%c0_4, %c0_5] : memref<128x128xbf16, #tpu.memory_space<vmem>>, vector<128x128xbf16>
    %cst = arith.constant dense<0.000000e+00> : vector<128x128xf32>
    %6 = tpu.matmul %4, %5, %cst {dimension_numbers = #tpu.dot_dimension_numbers<[1], [0], [0], [1], [0, 0, 1, 1], [], []>} : vector<128x128xbf16>, vector<128x128xbf16>, vector<128x128xf32> -> vector<128x128xf32>
    %7 = arith.addf %3, %6 : vector<128x128xf32>
    %c0_6 = arith.constant 0 : index
    %c0_7 = arith.constant 0 : index
    %8 = vector.load %arg7[%c0_6, %c0_7] : memref<128x128xf32, #tpu.memory_space<vmem>>, vector<128x128xf32>
    tpu.vector_store %arg7[%c0_6, %c0_7], %7 {strides = array<i32>} : memref<128x128xf32, #tpu.memory_space<vmem>>, vector<128x128xf32>,
    %c0_i32_8 = arith.constant 0 : i32
    %9 = arith.cmpi eq, %arg2, %c0_i32_8 : i32
    %10 = arith.extui %9 : i1 to i32
    %c0_i32_9 = arith.constant 0 : i32
    %11 = arith.cmpi ne, %10, %c0_i32_9 : i32
    scf.if %11 {
      %c0_10 = arith.constant 0 : index
      %c0_11 = arith.constant 0 : index
      %12 = vector.load %arg7[%c0_10, %c0_11] : memref<128x128xf32, #tpu.memory_space<vmem>>, vector<128x128xf32>
      %c0_12 = arith.constant 0 : index
      %c0_13 = arith.constant 0 : index
      %13 = vector.load %arg5[%c0_12, %c0_13] : memref<1x128xf32, #tpu.memory_space<vmem>>, vector<1x128xf32>
      %14 = vector.broadcast %13 : vector<1x128xf32> to vector<128x128xf32>
      %15 = arith.addf %12, %14 : vector<128x128xf32>
      %cst_14 = arith.constant 0.000000e+00 : f32
      %16 = vector.broadcast %cst_14 : f32 to vector<128x128xf32>
      %17 = arith.maximumf %15, %16 : vector<128x128xf32>
      %18 = arith.truncf %17 : vector<128x128xf32> to vector<128x128xbf16>
      %c0_15 = arith.constant 0 : index
      %c0_16 = arith.constant 0 : index
      %19 = vector.load %arg6[%c0_15, %c0_16] : memref<128x128xbf16, #tpu.memory_space<vmem>>, vector<128x128xbf16>
      tpu.vector_store %arg6[%c0_15, %c0_16], %18 {strides = array<i32>} : memref<128x128xbf16, #tpu.memory_space<vmem>>, vector<128x128xbf16>,
    } else {
    }
    return
  }
  func.func @transform_0(%arg0: i32, %arg1: i32, %arg2: i32) -> (i32, i32) {
    %c0_i32 = arith.constant 0 : i32
    return %arg0, %arg2 : i32, i32
  }
  func.func @transform_1(%arg0: i32, %arg1: i32, %arg2: i32) -> (i32, i32) {
    %c0_i32 = arith.constant 0 : i32
    return %arg2, %arg1 : i32, i32
  }
  func.func @transform_2(%arg0: i32, %arg1: i32, %arg2: i32) -> (i32, i32) {
    %c0_i32 = arith.constant 0 : i32
    %c0_i32_0 = arith.constant 0 : i32
    return %c0_i32, %arg1 : i32, i32
  }
  func.func @transform_3(%arg0: i32, %arg1: i32, %arg2: i32) -> (i32, i32) {
    %c0_i32 = arith.constant 0 : i32
    return %arg0, %arg1 : i32, i32
  }
}

module attributes {stable_mosaic.version = 11 : i64} {
  func.func @_fused_matmul_kernel(%arg0: i32, %arg1: i32, %arg2: i32, %arg3: memref<128x128xbf16, #tpu.memory_space<vmem>>, %arg4: memref<128x128xbf16, #tpu.memory_space<vmem>>, %arg5: memref<1x128xf32, #tpu.memory_space<vmem>>, %arg6: memref<128x128xf32, #tpu.memory_space<vmem>>, %arg7: memref<128x128xf32, #tpu.memory_space<vmem>>) attributes {dimension_semantics = [#tpu.dimension_semantics<parallel>, #tpu.dimension_semantics<parallel>, #tpu.dimension_semantics<arbitrary>], iteration_bounds = array<i64: 1, 1, 1>, scalar_prefetch = 0 : i64, scratch_operands = 1 : i64, tpu.core_type = #tpu.core_type<tc>, window_params = [{transform_indices = @transform_0, window_bounds = array<i64: 128, 128>}, {transform_indices = @transform_1, window_bounds = array<i64: 128, 128>}, {transform_indices = @transform_2, window_bounds = array<i64: 1, 128>}, {transform_indices = @transform_3, window_bounds = array<i64: 128, 128>}]} {
    %c0_i32 = arith.constant 0 : i32
    %0 = arith.cmpi eq, %arg2, %c0_i32 : i32
    %1 = arith.extui %0 : i1 to i32
    %c0_i32_0 = arith.constant 0 : i32
    %2 = arith.cmpi ne, %1, %c0_i32_0 : i32
    scf.if %2 {
      %cst_10 = arith.constant 0.000000e+00 : f32
      %12 = vector.broadcast %cst_10 : f32 to vector<128x128xf32>
      %c0_11 = arith.constant 0 : index
      %c0_12 = arith.constant 0 : index
      %13 = vector.load %arg7[%c0_11, %c0_12] : memref<128x128xf32, #tpu.memory_space<vmem>>, vector<128x128xf32>
      tpu.vector_store %arg7[%c0_11, %c0_12], %12 {strides = array<i32>} : memref<128x128xf32, #tpu.memory_space<vmem>>, vector<128x128xf32>,
    } else {
    }
    %c0 = arith.constant 0 : index
    %c0_1 = arith.constant 0 : index
    %3 = vector.load %arg7[%c0, %c0_1] : memref<128x128xf32, #tpu.memory_space<vmem>>, vector<128x128xf32>
    %c0_2 = arith.constant 0 : index
    %c0_3 = arith.constant 0 : index
    %4 = vector.load %arg3[%c0_2, %c0_3] : memref<128x128xbf16, #tpu.memory_space<vmem>>, vector<128x128xbf16>
    %c0_4 = arith.constant 0 : index
    %c0_5 = arith.constant 0 : index
    %5 = vector.load %arg4[%c0_4, %c0_5] : memref<128x128xbf16, #tpu.memory_space<vmem>>, vector<128x128xbf16>
    %cst = arith.constant dense<0.000000e+00> : vector<128x128xf32>
    %6 = tpu.matmul %4, %5, %cst {dimension_numbers = #tpu.dot_dimension_numbers<[1], [0], [0], [1], [0, 0, 1, 1], [], []>} : vector<128x128xbf16>, vector<128x128xbf16>, vector<128x128xf32> -> vector<128x128xf32>
    %7 = arith.addf %3, %6 : vector<128x128xf32>
    %c0_6 = arith.constant 0 : index
    %c0_7 = arith.constant 0 : index
    %8 = vector.load %arg7[%c0_6, %c0_7] : memref<128x128xf32, #tpu.memory_space<vmem>>, vector<128x128xf32>
    tpu.vector_store %arg7[%c0_6, %c0_7], %7 {strides = array<i32>} : memref<128x128xf32, #tpu.memory_space<vmem>>, vector<128x128xf32>,
    %c0_i32_8 = arith.constant 0 : i32
    %9 = arith.cmpi eq, %arg2, %c0_i32_8 : i32
    %10 = arith.extui %9 : i1 to i32
    %c0_i32_9 = arith.constant 0 : i32
    %11 = arith.cmpi ne, %10, %c0_i32_9 : i32
    scf.if %11 {
      %c0_10 = arith.constant 0 : index
      %c0_11 = arith.constant 0 : index
      %12 = vector.load %arg7[%c0_10, %c0_11] : memref<128x128xf32, #tpu.memory_space<vmem>>, vector<128x128xf32>
      %c0_12 = arith.constant 0 : index
      %c0_13 = arith.constant 0 : index
      %13 = vector.load %arg5[%c0_12, %c0_13] : memref<1x128xf32, #tpu.memory_space<vmem>>, vector<1x128xf32>
      %14 = vector.broadcast %13 : vector<1x128xf32> to vector<128x128xf32>
      %15 = arith.addf %12, %14 : vector<128x128xf32>
      %cst_14 = arith.constant 0.000000e+00 : f32
      %16 = vector.broadcast %cst_14 : f32 to vector<128x128xf32>
      %17 = arith.maximumf %15, %16 : vector<128x128xf32>
      %c0_15 = arith.constant 0 : index
      %c0_16 = arith.constant 0 : index
      %18 = vector.load %arg6[%c0_15, %c0_16] : memref<128x128xf32, #tpu.memory_space<vmem>>, vector<128x128xf32>
      tpu.vector_store %arg6[%c0_15, %c0_16], %17 {strides = array<i32>} : memref<128x128xf32, #tpu.memory_space<vmem>>, vector<128x128xf32>,
    } else {
    }
    return
  }
  func.func @transform_0(%arg0: i32, %arg1: i32, %arg2: i32) -> (i32, i32) {
    %c0_i32 = arith.constant 0 : i32
    return %arg0, %arg2 : i32, i32
  }
  func.func @transform_1(%arg0: i32, %arg1: i32, %arg2: i32) -> (i32, i32) {
    %c0_i32 = arith.constant 0 : i32
    return %arg2, %arg1 : i32, i32
  }
  func.func @transform_2(%arg0: i32, %arg1: i32, %arg2: i32) -> (i32, i32) {
    %c0_i32 = arith.constant 0 : i32
    %c0_i32_0 = arith.constant 0 : i32
    return %c0_i32, %arg1 : i32, i32
  }
  func.func @transform_3(%arg0: i32, %arg1: i32, %arg2: i32) -> (i32, i32) {
    %c0_i32 = arith.constant 0 : i32
    return %arg0, %arg1 : i32, i32
  }
}

</mosaic_0001>

<bundles_post_ra>
// kernel: basic_block_forward.3
= control target key start
LH: loop header
LB: loop body
LE: loop exit
PB: predicated region body
PF: predicated region fallthrough
CT: control target
= control target key end

     0   :  { %s602_s1 = inlined_call_operand.vmem [shape: bf16[128,128], index: 1, kind: input, shape index: {}]   ;;  %s603_s0 = inlined_call_operand.vmem [shape: bf16[128,128], index: 0, kind: input, shape index: {}]   ;;  %s604_s2 = inlined_call_operand.vmem [shape: f32[1,128], index: 2, kind: input, shape index: {}]   ;;  %s605_s3 = inlined_call_operand.vmem [shape: f32[128,128], index: 3, kind: output, shape index: {}]  }
   0x1   :  { %v467_v0 = vld [vmem:[%s602_s1] sm:$0xff]   ;;  %v468_v1 = vld [vmem:[%s602_s1 + $0x8] sm:$0xff]   ;;  %v469_v2 = vld [vmem:[%s602_s1 + $0x10] sm:$0xff]  }
   0x2   :  { %419 = vmatprep.subr.bf16.mxu0 %v467_v0  ;;  %451 = vmatprep.subr.bf16.mxu1 %v467_v0  ;;  %v470_v3 = vld [vmem:[%s602_s1 + $0x18] sm:$0xff]   ;;  %v475_v4 = vld [vmem:[%s603_s0] sm:$0xff]   ;;  %v472_v7 = vld [vmem:[%s602_s1 + $0x28] sm:$0xff]  }
   0x3   :  { %420 = vmatpush3.bf16.msra.mxu0 %v467_v0  ;;  %459 = vmatpush3.bf16.msra.mxu1 %v467_v0  ;;  %v476_v5 = vld [vmem:[%s603_s0 + $0x20] sm:$0xff]   ;;  %v473_v8 = vld [vmem:[%s602_s1 + $0x30] sm:$0xff]   ;;  %v474_v9 = vld [vmem:[%s602_s1 + $0x38] sm:$0xff]  }
   0x4   :  { %421 = vmatprep.subr.bf16.mxu0 %v468_v1  ;;  %452 = vmatprep.subr.bf16.mxu1 %v468_v1  ;;  %v471_v6 = vld [vmem:[%s602_s1 + $0x20] sm:$0xff]   ;;  %v477_v10 = vld [vmem:[%s603_s0 + $0x8] sm:$0xff]   ;;  %v479_v12 = vld [vmem:[%s603_s0 + $0x10] sm:$0xff]  }
   0x5   :  { %435 = vmatprep.mubr.bf16.mxu0 %v475_v4  ;;  %443 = vmatprep.mubr.bf16.mxu1 %v476_v5  ;;  %v478_v11 = vld [vmem:[%s603_s0 + $0x28] sm:$0xff]   ;;  %v480_v13 = vld [vmem:[%s603_s0 + $0x30] sm:$0xff]   ;;  %v481_v14 = vld [vmem:[%s603_s0 + $0x18] sm:$0xff]  }
   0x6   :  { %v482_v15 = vld [vmem:[%s603_s0 + $0x38] sm:$0xff]   ;;  %v402_v16 = vld [vmem:[%s604_s2] ss:$0 sm:$0xff] }
   0x7   :  { %422 = vmatpush3.bf16.msra.mxu0 %v468_v1  ;;  %460 = vmatpush3.bf16.msra.mxu1 %v468_v1 }
   0x8   :  { %423 = vmatprep.subr.bf16.mxu0 %v469_v2  ;;  %453 = vmatprep.subr.bf16.mxu1 %v469_v2 }
   0xb   :  { %424 = vmatpush3.bf16.msra.mxu0 %v469_v2  ;;  %461 = vmatpush3.bf16.msra.mxu1 %v469_v2 }
   0xc   :  { %425 = vmatprep.subr.bf16.mxu0 %v470_v3  ;;  %454 = vmatprep.subr.bf16.mxu1 %v470_v3 }
   0xf   :  { %426 = vmatpush3.bf16.msra.mxu0 %v470_v3  ;;  %462 = vmatpush3.bf16.msra.mxu1 %v470_v3 }
  0x10   :  { %427 = vmatprep.subr.bf16.mxu0 %v471_v6  ;;  %455 = vmatprep.subr.bf16.mxu1 %v471_v6 }
  0x13   :  { %428 = vmatpush3.bf16.msra.mxu0 %v471_v6  ;;  %463 = vmatpush3.bf16.msra.mxu1 %v471_v6 }
  0x14   :  { %429 = vmatprep.subr.bf16.mxu0 %v472_v7  ;;  %456 = vmatprep.subr.bf16.mxu1 %v472_v7 }
  0x17   :  { %430 = vmatpush3.bf16.msra.mxu0 %v472_v7  ;;  %464 = vmatpush3.bf16.msra.mxu1 %v472_v7 }
  0x18   :  { %431 = vmatprep.subr.bf16.mxu0 %v473_v8  ;;  %457 = vmatprep.subr.bf16.mxu1 %v473_v8 }
  0x1b   :  { %432 = vmatpush3.bf16.msra.mxu0 %v473_v8  ;;  %465 = vmatpush3.bf16.msra.mxu1 %v473_v8 }
  0x1c   :  { %433 = vmatprep.subr.bf16.mxu0 %v474_v9  ;;  %458 = vmatprep.subr.bf16.mxu1 %v474_v9 }
  0x1f   :  { %434 = vmatpush3.bf16.msra.mxu0 %v474_v9  ;;  %466 = vmatpush3.bf16.msra.mxu1 %v474_v9 }
  0x22   :  { %436 = vmatmul.mubr.bf16.vlgmr.msra.gmra.mrb[0].mxu0 %v477_v10  ;;  %444 = vmatmul.mubr.bf16.vlgmr.msra.gmra.mrb[0].mxu1 %v478_v11 }
  0x23   :  { %439 = vmatprep.mubr.bf16.mxu0 %v479_v12  ;;  %447 = vmatprep.mubr.bf16.mxu1 %v480_v13 }
  0x2a   :  { %440 = vmatmul.mubr.bf16.gmra.mrb[4].mxu0 %v481_v14  ;;  %448 = vmatmul.mubr.bf16.gmra.mrb[4].mxu1 %v482_v15 }
  0xf5   :  { %v437_v17 = vpop.f32.mrb[0].mxu0  ;;  %v445_v18 = vpop.f32.mrb[0].mxu1 }
  0xf6   :  { %v336_v19 = vadd.f32 %v437_v17, %v402_v16  ;;  %v344_v20 = vadd.f32 %v445_v18, %v402_v16  ;;  %v213_v21 = vpop.f32.mrb[1].mxu0  ;;  %v245_v22 = vpop.f32.mrb[1].mxu1 }
  0xf7   :  { %v334_v23 = vadd.f32 %v402_v16, %v213_v21  ;;  %v342_v24 = vadd.f32 %v402_v16, %v245_v22  ;;  %v438_v25 = vpop.f32.mrb[2].mxu0  ;;  %v446_v26 = vpop.f32.mrb[2].mxu1 }
  0xf8   :  { %v352_v27 = vmax.f32 %v336_v19, 0.0  ;;  %v360_v28 = vmax.f32 %v344_v20, 0.0  ;;  %v337_v29 = vadd.f32 %v438_v25, %v402_v16  ;;  %v345_v30 = vadd.f32 %v446_v26, %v402_v16  ;;  %v216_v31 = vpop.f32.mrb[3].mxu0  ;;  %v248_v32 = vpop.f32.mrb[3].mxu1 }
  0xf9   :  { %v350_v33 = vmax.f32 %v334_v23, 0.0  ;;  %v358_v34 = vmax.f32 %v342_v24, 0.0  ;;  %v335_v35 = vadd.f32 %v402_v16, %v216_v31  ;;  %v343_v36 = vadd.f32 %v402_v16, %v248_v32 }
  0xfa   :  { %368 = vst [vmem:[%s605_s3 + $0x10] sm:$0xff] %v352_v27  ;;  %376 = vst [vmem:[%s605_s3 + $0x50] sm:$0xff] %v360_v28  ;;  %v353_v37 = vmax.f32 %v337_v29, 0.0  ;;  %v361_v38 = vmax.f32 %v345_v30, 0.0 }
  0xfb   :  { %366 = vst [vmem:[%s605_s3] sm:$0xff] %v350_v33  ;;  %374 = vst [vmem:[%s605_s3 + $0x40] sm:$0xff] %v358_v34  ;;  %v351_v39 = vmax.f32 %v335_v35, 0.0  ;;  %v359_v40 = vmax.f32 %v343_v36, 0.0 }
  0xfc   :  { %369 = vst [vmem:[%s605_s3 + $0x18] sm:$0xff] %v353_v37  ;;  %377 = vst [vmem:[%s605_s3 + $0x58] sm:$0xff] %v361_v38 }
  0xfd   :  { %367 = vst [vmem:[%s605_s3 + $0x8] sm:$0xff] %v351_v39  ;;  %375 = vst [vmem:[%s605_s3 + $0x48] sm:$0xff] %v359_v40  ;;  %v441_v41 = vpop.f32.mrb[4].mxu0  ;;  %v449_v42 = vpop.f32.mrb[4].mxu1 }
  0xfe   :  { %v340_v43 = vadd.f32 %v441_v41, %v402_v16  ;;  %v348_v44 = vadd.f32 %v449_v42, %v402_v16  ;;  %v229_v45 = vpop.f32.mrb[5].mxu0  ;;  %v261_v46 = vpop.f32.mrb[5].mxu1 }
  0xff   :  { %v338_v47 = vadd.f32 %v402_v16, %v229_v45  ;;  %v346_v48 = vadd.f32 %v402_v16, %v261_v46  ;;  %v442_v49 = vpop.f32.mrb[6].mxu0  ;;  %v450_v50 = vpop.f32.mrb[6].mxu1 }
 0x100   :  { %v356_v51 = vmax.f32 %v340_v43, 0.0  ;;  %v364_v52 = vmax.f32 %v348_v44, 0.0  ;;  %v341_v53 = vadd.f32 %v442_v49, %v402_v16  ;;  %v349_v54 = vadd.f32 %v450_v50, %v402_v16  ;;  %v232_v55 = vpop.f32.mrb[7].mxu0  ;;  %v264_v56 = vpop.f32.mrb[7].mxu1 }
 0x101   :  { %v354_v57 = vmax.f32 %v338_v47, 0.0  ;;  %v362_v58 = vmax.f32 %v346_v48, 0.0  ;;  %v339_v59 = vadd.f32 %v402_v16, %v232_v55  ;;  %v347_v60 = vadd.f32 %v402_v16, %v264_v56 }
 0x102   :  { %372 = vst [vmem:[%s605_s3 + $0x30] sm:$0xff] %v356_v51  ;;  %380 = vst [vmem:[%s605_s3 + $0x70] sm:$0xff] %v364_v52  ;;  %v357_v61 = vmax.f32 %v341_v53, 0.0  ;;  %v365_v62 = vmax.f32 %v349_v54, 0.0 }
 0x103   :  { %370 = vst [vmem:[%s605_s3 + $0x20] sm:$0xff] %v354_v57  ;;  %378 = vst [vmem:[%s605_s3 + $0x60] sm:$0xff] %v362_v58  ;;  %v355_v63 = vmax.f32 %v339_v59, 0.0  ;;  %v363_v0 = vmax.f32 %v347_v60, 0.0 }
 0x104   :  { %373 = vst [vmem:[%s605_s3 + $0x38] sm:$0xff] %v357_v61  ;;  %381 = vst [vmem:[%s605_s3 + $0x78] sm:$0xff] %v365_v62 }
 0x105   :  { %371 = vst [vmem:[%s605_s3 + $0x28] sm:$0xff] %v355_v63  ;;  %379 = vst [vmem:[%s605_s3 + $0x68] sm:$0xff] %v363_v0 }

// kernel: basic_block_forward.2
= control target key start
LH: loop header
LB: loop body
LE: loop exit
PB: predicated region body
PF: predicated region fallthrough
CT: control target
= control target key end

     0   :  { %s721_s1 = inlined_call_operand.vmem [shape: bf16[128,128], index: 1, kind: input, shape index: {}]   ;;  %s722_s0 = inlined_call_operand.vmem [shape: bf16[128,128], index: 0, kind: input, shape index: {}]   ;;  %s723_s2 = inlined_call_operand.vmem [shape: f32[1,128], index: 2, kind: input, shape index: {}]   ;;  %s724_s3 = inlined_call_operand.vmem [shape: bf16[128,128], index: 3, kind: output, shape index: {}]  }
   0x1   :  { %v610_v0 = vld [vmem:[%s721_s1] sm:$0xff]   ;;  %v611_v1 = vld [vmem:[%s721_s1 + $0x8] sm:$0xff]   ;;  %v612_v2 = vld [vmem:[%s721_s1 + $0x10] sm:$0xff]  }
   0x2   :  { %562 = vmatprep.subr.bf16.mxu0 %v610_v0  ;;  %594 = vmatprep.subr.bf16.mxu1 %v610_v0  ;;  %v613_v3 = vld [vmem:[%s721_s1 + $0x18] sm:$0xff]   ;;  %v618_v4 = vld [vmem:[%s722_s0] sm:$0xff]   ;;  %v615_v7 = vld [vmem:[%s721_s1 + $0x28] sm:$0xff]  }
   0x3   :  { %563 = vmatpush3.bf16.msra.mxu0 %v610_v0  ;;  %602 = vmatpush3.bf16.msra.mxu1 %v610_v0  ;;  %v619_v5 = vld [vmem:[%s722_s0 + $0x20] sm:$0xff]   ;;  %v616_v8 = vld [vmem:[%s721_s1 + $0x30] sm:$0xff]   ;;  %v617_v9 = vld [vmem:[%s721_s1 + $0x38] sm:$0xff]  }
   0x4   :  { %564 = vmatprep.subr.bf16.mxu0 %v611_v1  ;;  %595 = vmatprep.subr.bf16.mxu1 %v611_v1  ;;  %v614_v6 = vld [vmem:[%s721_s1 + $0x20] sm:$0xff]   ;;  %v620_v10 = vld [vmem:[%s722_s0 + $0x8] sm:$0xff]   ;;  %v622_v12 = vld [vmem:[%s722_s0 + $0x10] sm:$0xff]  }
   0x5   :  { %578 = vmatprep.mubr.bf16.mxu0 %v618_v4  ;;  %586 = vmatprep.mubr.bf16.mxu1 %v619_v5  ;;  %v621_v11 = vld [vmem:[%s722_s0 + $0x28] sm:$0xff]   ;;  %v623_v13 = vld [vmem:[%s722_s0 + $0x30] sm:$0xff]   ;;  %v624_v14 = vld [vmem:[%s722_s0 + $0x18] sm:$0xff]  }
   0x6   :  { %v625_v15 = vld [vmem:[%s722_s0 + $0x38] sm:$0xff]   ;;  %v466_v16 = vld [vmem:[%s723_s2] ss:$0 sm:$0xff] }
   0x7   :  { %565 = vmatpush3.bf16.msra.mxu0 %v611_v1  ;;  %603 = vmatpush3.bf16.msra.mxu1 %v611_v1 }
   0x8   :  { %566 = vmatprep.subr.bf16.mxu0 %v612_v2  ;;  %596 = vmatprep.subr.bf16.mxu1 %v612_v2 }
   0xb   :  { %567 = vmatpush3.bf16.msra.mxu0 %v612_v2  ;;  %604 = vmatpush3.bf16.msra.mxu1 %v612_v2 }
   0xc   :  { %568 = vmatprep.subr.bf16.mxu0 %v613_v3  ;;  %597 = vmatprep.subr.bf16.mxu1 %v613_v3 }
   0xf   :  { %569 = vmatpush3.bf16.msra.mxu0 %v613_v3  ;;  %605 = vmatpush3.bf16.msra.mxu1 %v613_v3 }
  0x10   :  { %570 = vmatprep.subr.bf16.mxu0 %v614_v6  ;;  %598 = vmatprep.subr.bf16.mxu1 %v614_v6 }
  0x13   :  { %571 = vmatpush3.bf16.msra.mxu0 %v614_v6  ;;  %606 = vmatpush3.bf16.msra.mxu1 %v614_v6 }
  0x14   :  { %572 = vmatprep.subr.bf16.mxu0 %v615_v7  ;;  %599 = vmatprep.subr.bf16.mxu1 %v615_v7 }
  0x17   :  { %573 = vmatpush3.bf16.msra.mxu0 %v615_v7  ;;  %607 = vmatpush3.bf16.msra.mxu1 %v615_v7 }
  0x18   :  { %574 = vmatprep.subr.bf16.mxu0 %v616_v8  ;;  %600 = vmatprep.subr.bf16.mxu1 %v616_v8 }
  0x1b   :  { %575 = vmatpush3.bf16.msra.mxu0 %v616_v8  ;;  %608 = vmatpush3.bf16.msra.mxu1 %v616_v8 }
  0x1c   :  { %576 = vmatprep.subr.bf16.mxu0 %v617_v9  ;;  %601 = vmatprep.subr.bf16.mxu1 %v617_v9 }
  0x1f   :  { %577 = vmatpush3.bf16.msra.mxu0 %v617_v9  ;;  %609 = vmatpush3.bf16.msra.mxu1 %v617_v9 }
  0x22   :  { %579 = vmatmul.mubr.bf16.vlgmr.msra.gmra.mrb[0].mxu0 %v620_v10  ;;  %587 = vmatmul.mubr.bf16.vlgmr.msra.gmra.mrb[0].mxu1 %v621_v11 }
  0x23   :  { %582 = vmatprep.mubr.bf16.mxu0 %v622_v12  ;;  %590 = vmatprep.mubr.bf16.mxu1 %v623_v13 }
  0x2a   :  { %583 = vmatmul.mubr.bf16.gmra.mrb[4].mxu0 %v624_v14  ;;  %591 = vmatmul.mubr.bf16.gmra.mrb[4].mxu1 %v625_v15 }
  0xf5   :  { %v580_v17 = vpop.f32.mrb[0].mxu0  ;;  %v588_v18 = vpop.f32.mrb[0].mxu1 }
  0xf6   :  { %v336_v19 = vadd.f32 %v580_v17, %v466_v16  ;;  %v344_v20 = vadd.f32 %v588_v18, %v466_v16  ;;  %v213_v21 = vpop.f32.mrb[1].mxu0  ;;  %v245_v22 = vpop.f32.mrb[1].mxu1 }
  0xf7   :  { %v334_v23 = vadd.f32 %v466_v16, %v213_v21  ;;  %v342_v24 = vadd.f32 %v466_v16, %v245_v22  ;;  %v581_v25 = vpop.f32.mrb[2].mxu0  ;;  %v589_v26 = vpop.f32.mrb[2].mxu1 }
  0xf8   :  { %v337_v27 = vadd.f32 %v581_v25, %v466_v16  ;;  %v345_v28 = vadd.f32 %v589_v26, %v466_v16  ;;  %v216_v29 = vpop.f32.mrb[3].mxu0  ;;  %v248_v30 = vpop.f32.mrb[3].mxu1  ;;  %v352_v33 = vmax.f32 %v336_v19, 0.0  ;;  %v360_v34 = vmax.f32 %v344_v20, 0.0 }
  0xf9   :  { %v335_v31 = vadd.f32 %v466_v16, %v216_v29  ;;  %v343_v32 = vadd.f32 %v466_v16, %v248_v30  ;;  %v350_v37 = vmax.f32 %v334_v23, 0.0  ;;  %v358_v38 = vmax.f32 %v342_v24, 0.0 }
  0xfa   :  { %v353_v35 = vmax.f32 %v337_v27, 0.0  ;;  %v361_v36 = vmax.f32 %v345_v28, 0.0 }
  0xfb   :  { %v351_v39 = vmax.f32 %v335_v31, 0.0  ;;  %v359_v40 = vmax.f32 %v343_v32, 0.0 }
  0xfc   :  { %v507_v41 = vpack.c.bf16 %v353_v35, %v352_v33  ;;  %v527_v42 = vpack.c.bf16 %v361_v36, %v360_v34 }
  0xfd   :  { %v502_v43 = vpack.c.bf16 %v351_v39, %v350_v37  ;;  %v522_v44 = vpack.c.bf16 %v359_v40, %v358_v38  ;;  %v584_v45 = vpop.f32.mrb[4].mxu0  ;;  %v592_v46 = vpop.f32.mrb[4].mxu1 }
  0xfe   :  { %539 = vst [vmem:[%s724_s3 + $0x8] sm:$0xff] %v507_v41   ;;  %543 = vst [vmem:[%s724_s3 + $0x28] sm:$0xff] %v527_v42   ;;  %v340_v47 = vadd.f32 %v584_v45, %v466_v16  ;;  %v348_v48 = vadd.f32 %v592_v46, %v466_v16  ;;  %v229_v49 = vpop.f32.mrb[5].mxu0  ;;  %v261_v50 = vpop.f32.mrb[5].mxu1 }
  0xff   :  { %503 = vst [vmem:[%s724_s3] sm:$0xff] %v502_v43   ;;  %542 = vst [vmem:[%s724_s3 + $0x20] sm:$0xff] %v522_v44   ;;  %v338_v51 = vadd.f32 %v466_v16, %v229_v49  ;;  %v346_v52 = vadd.f32 %v466_v16, %v261_v50  ;;  %v585_v53 = vpop.f32.mrb[6].mxu0  ;;  %v593_v54 = vpop.f32.mrb[6].mxu1 }
 0x100   :  { %v341_v55 = vadd.f32 %v585_v53, %v466_v16  ;;  %v349_v56 = vadd.f32 %v593_v54, %v466_v16  ;;  %v232_v57 = vpop.f32.mrb[7].mxu0  ;;  %v264_v58 = vpop.f32.mrb[7].mxu1  ;;  %v356_v61 = vmax.f32 %v340_v47, 0.0  ;;  %v364_v62 = vmax.f32 %v348_v48, 0.0 }
 0x101   :  { %v339_v59 = vadd.f32 %v466_v16, %v232_v57  ;;  %v347_v60 = vadd.f32 %v466_v16, %v264_v58  ;;  %v354_v1 = vmax.f32 %v338_v51, 0.0  ;;  %v362_v2 = vmax.f32 %v346_v52, 0.0 }
 0x102   :  { %v357_v63 = vmax.f32 %v341_v55, 0.0  ;;  %v365_v0 = vmax.f32 %v349_v56, 0.0 }
 0x103   :  { %v355_v3 = vmax.f32 %v339_v59, 0.0  ;;  %v363_v4 = vmax.f32 %v347_v60, 0.0 }
 0x104   :  { %v517_v5 = vpack.c.bf16 %v357_v63, %v356_v61  ;;  %v537_v6 = vpack.c.bf16 %v365_v0, %v364_v62 }
 0x105   :  { %v512_v7 = vpack.c.bf16 %v355_v3, %v354_v1  ;;  %v532_v8 = vpack.c.bf16 %v363_v4, %v362_v2 }
 0x106   :  { %541 = vst [vmem:[%s724_s3 + $0x18] sm:$0xff] %v517_v5   ;;  %545 = vst [vmem:[%s724_s3 + $0x38] sm:$0xff] %v537_v6  }
 0x107   :  { %540 = vst [vmem:[%s724_s3 + $0x10] sm:$0xff] %v512_v7   ;;  %544 = vst [vmem:[%s724_s3 + $0x30] sm:$0xff] %v532_v8  }

</bundles_post_ra>
